<compile_context>
chip_gen: v7x
topology: tpu7x:2x2x1
jax: 0.10.0
libtpu: 0.0.40
codegen_flags: <defaults>
</compile_context>

<pallas_src>
import functools

import jax
import jax.numpy as jnp
from jax.experimental import pallas as pl
from jax.experimental.pallas import tpu as pltpu


# --------------------------- VMEM budget (per chip) ---------------------------

_VMEM_LIMIT_CACHE = None


def _vmem_limit_bytes():
    """Half of physical VMEM: 32 MiB on v7x, 64 MiB on v5e/v6e (safe default 32)."""
    global _VMEM_LIMIT_CACHE
    if _VMEM_LIMIT_CACHE is None:
        limit = 32 * 1024 * 1024
        try:
            info = pltpu.get_tpu_info()
            phys = int(getattr(info, "vmem_capacity_bytes", 0) or 0)
            if phys > 0:
                limit = max(limit, phys // 2)
        except Exception:
            pass
        _VMEM_LIMIT_CACHE = limit
    return _VMEM_LIMIT_CACHE


# ----------------------------- linear projection -----------------------------

def _linear_resident_kernel(x_ref, w_ref, b_ref, o_ref):
    # x_ref: (TM, Din); w_ref: (Din, Dout) full, resident; b_ref: (1, Dout)
    acc = jnp.dot(x_ref[...], w_ref[...], preferred_element_type=jnp.float32)
    o_ref[...] = (acc + b_ref[...].astype(jnp.float32)).astype(o_ref.dtype)


def _linear_ktiled_kernel(x_ref, w_ref, b_ref, o_ref, acc_ref):
    # x_ref: (TM, TK); w_ref: (TK, TN); b_ref: (1, TN); acc_ref: (TM, TN) f32
    @pl.when(pl.program_id(2) == 0)
    def _init():
        acc_ref[...] = jnp.zeros_like(acc_ref)

    acc_ref[...] += jnp.dot(x_ref[...], w_ref[...],
                            preferred_element_type=jnp.float32)

    @pl.when(pl.program_id(2) == pl.num_programs(2) - 1)
    def _store():
        o_ref[...] = (acc_ref[...] + b_ref[...].astype(jnp.float32)
                      ).astype(o_ref.dtype)


def embed_linear(x, w, b, *, force_stream=False):
    """x: (B, T, Din); w: (Din, Dout) pre-transposed; b: (Dout,)."""
    B, T, Din = x.shape
    Dout = w.shape[1]
    M = B * T
    xf = x.reshape(M, Din)
    b2 = b.reshape(1, Dout)
    itm = jnp.dtype(x.dtype).itemsize
    vmem_limit = _vmem_limit_bytes()
    budget = int(vmem_limit * 0.85)

    # ---- variant A: weight fully resident in VMEM, grid over M only ----
    tm_resident = None
    if not force_stream:
        for tm in (1024, 512, 256, 128):
            TM = M if M <= tm else tm
            # conservative: count every block double-buffered
            need = itm * (2 * TM * Din + 2 * Din * Dout + 2 * TM * Dout + 2 * Dout)
            if need <= budget:
                tm_resident = TM
                break

    if tm_resident is not None:
        TM = tm_resident
        cost = pl.CostEstimate(
            flops=2 * M * Din * Dout, transcendentals=0,
            bytes_accessed=(M * Din + Din * Dout + Dout + M * Dout) * itm)
        out = pl.pallas_call(
            _linear_resident_kernel,
            out_shape=jax.ShapeDtypeStruct((M, Dout), x.dtype),
            grid=(pl.cdiv(M, TM),),
            in_specs=[
                pl.BlockSpec((TM, Din), lambda i: (i, 0)),
                # constant block index -> fetched from HBM exactly once
                pl.BlockSpec((Din, Dout), lambda i: (0, 0)),
                pl.BlockSpec((1, Dout), lambda i: (0, 0)),
            ],
            out_specs=pl.BlockSpec((TM, Dout), lambda i: (i, 0)),
            compiler_params=pltpu.CompilerParams(
                dimension_semantics=("parallel",),
                vmem_limit_bytes=vmem_limit),
            cost_estimate=cost,
        )(xf, w, b2)
        return out.reshape(B, T, Dout)

    # ---- variant B: K-tiled streaming matmul with f32 accumulator ----
    TM = M if M <= 512 else 512
    TN = Dout if Dout <= 1024 else 1024
    wp = w
    if Din <= 512:
        TK, Kp = Din, Din
    else:
        TK = 512
        Kp = ((Din + TK - 1) // TK) * TK
        if Kp != Din:          # zero-pad K so ragged K blocks stay correct
            xf = jnp.pad(xf, ((0, 0), (0, Kp - Din)))
            wp = jnp.pad(w, ((0, Kp - Din), (0, 0)))
    n_i, n_j, n_k = pl.cdiv(M, TM), pl.cdiv(Dout, TN), Kp // TK
    cost = pl.CostEstimate(
        flops=2 * M * Din * Dout, transcendentals=0,
        # x is re-read per Dout strip, the weight per M strip (true DMA traffic)
        bytes_accessed=(n_j * M * Kp + n_i * Kp * Dout + Dout + M * Dout) * itm)
    out = pl.pallas_call(
        _linear_ktiled_kernel,
        out_shape=jax.ShapeDtypeStruct((M, Dout), x.dtype),
        grid=(n_i, n_j, n_k),
        in_specs=[
            pl.BlockSpec((TM, TK), lambda i, j, k: (i, k)),
            pl.BlockSpec((TK, TN), lambda i, j, k: (k, j)),
            pl.BlockSpec((1, TN), lambda i, j, k: (0, j)),
        ],
        out_specs=pl.BlockSpec((TM, TN), lambda i, j, k: (i, j)),
        scratch_shapes=[pltpu.VMEM((TM, TN), jnp.float32)],
        compiler_params=pltpu.CompilerParams(
            dimension_semantics=("parallel", "parallel", "arbitrary"),
            vmem_limit_bytes=vmem_limit),
        cost_estimate=cost,
    )(xf, wp, b2)
    return out.reshape(B, T, Dout)


# ------------------------ conv1d (k=3, replicate pad) -------------------------

def _conv1d_kernel(x_ref, ph_ref, nh_ref, w_ref, b_ref, o_ref, *, fuse):
    # x_ref: (1, TT, Din) time tile; ph_ref/nh_ref: (1, n_tt, Din) halo rows
    # w_ref: (3, Din, TN); b_ref: (1, TN); o_ref: (1, TT, TN)
    x = x_ref[0]                                   # (TT, Din)
    TT = x.shape[0]
    ti = pl.program_id(2)
    ph = ph_ref[0, pl.ds(ti, 1), :]                # row preceding this tile
    nh = nh_ref[0, pl.ds(ti, 1), :]                # row following this tile

    row = jax.lax.broadcasted_iota(jnp.int32, (TT, 1), 0)   # small (TT,1) mask
    prev = jnp.where(row == 0, ph, pltpu.roll(x, shift=1, axis=0))       # x[t-1]
    nxt = jnp.where(row == TT - 1, nh, pltpu.roll(x, shift=TT - 1, axis=0))  # x[t+1]

    bias = b_ref[...].astype(jnp.float32)
    if fuse:
        # fuse the 3 taps into one K=3*Din matmul (better MXU depth occupancy)
        w3 = w_ref[...]
        w2 = w3.reshape(w3.shape[0] * w3.shape[1], w3.shape[2])
        xin = jnp.concatenate([prev, x, nxt], axis=-1)       # (TT, 3*Din)
        acc = jnp.dot(xin, w2, preferred_element_type=jnp.float32)
    else:
        acc = jnp.dot(prev, w_ref[0], preferred_element_type=jnp.float32)
        acc = acc + jnp.dot(x, w_ref[1], preferred_element_type=jnp.float32)
        acc = acc + jnp.dot(nxt, w_ref[2], preferred_element_type=jnp.float32)
    o_ref[0] = (acc + bias).astype(o_ref.dtype)


def embed_conv1d(x, w_k, b, *, force_tt=None, force_tn=None):
    """x: (B, T, Din); w_k: (3, Din, Dout) pre-transposed; b: (Dout,)."""
    B, T, Din = x.shape
    Dout = w_k.shape[2]
    itm = jnp.dtype(x.dtype).itemsize
    vmem_limit = _vmem_limit_bytes()
    budget = int(vmem_limit * 0.85)

    # ---- tile selection: Dout strip TN (outermost), time tile TT ----
    def _need(tt, tn, ntt):
        return itm * (2 * tt * Din + 2 * tt * tn + 2 * 3 * Din * tn
                      + 4 * ntt * Din + 2 * tn)

    tn_cands = [Dout] if Dout <= 1024 else [1024, 512, 256, 128]
    tt_cands = [T] + [t for t in (1024, 512, 256, 128, 64, 32, 16, 8) if t < T]
    TT = TN = None
    for tn in tn_cands:
        for tt in tt_cands:
            ntt = 1 if tt == T else -(-T // tt)
            if _need(tt, tn, ntt) <= budget:
                TT, TN = tt, tn
                break
        if TT is not None:
            break
    if TT is None:                                   # best effort
        TT = T if T <= 8 else 8
        TN = Dout if Dout <= 128 else 128
    if force_tt is not None:
        TT = force_tt
    if force_tn is not None:
        TN = force_tn

    # ---- pad T to a multiple of TT (replicate edge) so every tile is full ----
    if TT == T:
        x_pad, T_pad, n_tt = x, T, 1
    else:
        n_tt = -(-T // TT)
        T_pad = n_tt * TT
        x_pad = x if T_pad == T else jnp.pad(
            x, ((0, 0), (0, T_pad - T), (0, 0)), mode="edge")

    # ---- per-tile 1-row halos (tiny side arrays instead of a padded x copy) --
    starts = jnp.arange(n_tt, dtype=jnp.int32) * TT
    prev_idx = jnp.maximum(starts - 1, 0)            # replicate at the front
    next_idx = jnp.minimum(starts + TT, T_pad - 1)   # replicate at the back
    prev_h = jnp.take(x_pad, prev_idx, axis=1)        # (B, n_tt, Din)
    next_h = jnp.take(x_pad, next_idx, axis=1)        # (B, n_tt, Din)

    b2 = b.reshape(1, Dout)
    fuse = (Din % 128 == 0) and (Din <= 256)          # lane-aligned, MXU-shallow

    n_j = -(-Dout // TN)
    cost = pl.CostEstimate(
        flops=2 * 3 * B * T_pad * Din * Dout, transcendentals=0,
        bytes_accessed=(n_j * B * T_pad * Din + 3 * Din * Dout + Dout
                        + B * T_pad * Dout) * itm)

    out = pl.pallas_call(
        functools.partial(_conv1d_kernel, fuse=fuse),
        out_shape=jax.ShapeDtypeStruct((B, T_pad, Dout), x.dtype),
        # Dout strip outermost -> the (3, Din, TN) weight strip is DMA'd once
        # per strip and stays resident across all (batch, time) steps.
        grid=(n_j, B, n_tt),
        in_specs=[
            pl.BlockSpec((1, TT, Din), lambda j, bi, ti: (bi, ti, 0)),
            pl.BlockSpec((1, n_tt, Din), lambda j, bi, ti: (bi, 0, 0)),
            pl.BlockSpec((1, n_tt, Din), lambda j, bi, ti: (bi, 0, 0)),
            pl.BlockSpec((3, Din, TN), lambda j, bi, ti: (0, 0, j)),
            pl.BlockSpec((1, TN), lambda j, bi, ti: (0, j)),
        ],
        out_specs=pl.BlockSpec((1, TT, TN), lambda j, bi, ti: (bi, ti, j)),
        compiler_params=pltpu.CompilerParams(
            dimension_semantics=("parallel", "parallel", "parallel"),
            vmem_limit_bytes=vmem_limit),
        cost_estimate=cost,
    )(x_pad, prev_h, next_h, w_k, b2)
    return out[:, :T] if T_pad != T else out


# --------------------------------- module ------------------------------------

class Embed:
    """JAX/Pallas port of the PyTorch Embed module (forward only).

    Weights are stored in kernel-native layouts:
      linear: (Din, Dout)        conv: (3, Din, Dout)
    Construct with dtype=jnp.bfloat16 (and pass bf16 activations) to use bf16
    MXU inputs with f32 accumulation.
    """

    def __init__(self, in_features, out_features, bias=True, proj="linear",
                 key=None, dtype=jnp.float32):
        if key is None:
            key = jax.random.PRNGKey(42)
        self.proj = proj
        kw, kb = jax.random.split(key)
        if proj == "linear":
            bound = 1.0 / (in_features ** 0.5)
            self.w = jax.random.uniform(kw, (in_features, out_features),
                                        dtype, -bound, bound)
        else:
            bound = 1.0 / ((in_features * 3) ** 0.5)
            self.w = jax.random.uniform(kw, (3, in_features, out_features),
                                        dtype, -bound, bound)
        self.b = (jax.random.uniform(kb, (out_features,), dtype, -bound, bound)
                  if bias else jnp.zeros((out_features,), dtype))

    def __call__(self, inp):
        # inp: (B, T, D)
        if self.proj == "linear":
            return embed_linear(inp, self.w, self.b)
        return embed_conv1d(inp, self.w, self.b)


# ------------------------------ reference (JAX) -------------------------------

def _linear_ref(x, w, b):
    return jnp.einsum("btd,do->bto", x.astype(jnp.float32), w.astype(jnp.float32),
                      precision=jax.lax.Precision.HIGHEST) + b.astype(jnp.float32)


def _conv1d_ref(x, w_k, b):
    xf = x.astype(jnp.float32)
    wf = w_k.astype(jnp.float32)
    B, T, Din = xf.shape
    x_pad = jnp.pad(xf, ((0, 0), (1, 1), (0, 0)), mode="edge")
    out = jnp.zeros((B, T, wf.shape[2]), jnp.float32)
    for k in range(3):
        out = out + jnp.einsum("btd,do->bto", x_pad[:, k:k + T, :], wf[k],
                               precision=jax.lax.Precision.HIGHEST)
    return out + b.astype(jnp.float32)


def _check(got, want, atol, rtol, tag):
    assert got.shape == want.shape, f"{tag}: shape {got.shape} vs {want.shape}"
    got32 = got.astype(jnp.float32)
    ok = jnp.allclose(got32, want, atol=atol, rtol=rtol)
    assert bool(ok), f"{tag}: max abs err {float(jnp.max(jnp.abs(got32 - want)))}"


# ---------------------------------- main --------------------------------------

if __name__ == "__main__":
    root = jax.random.PRNGKey(0)
    kx, kp1, kp2, kx2, kp3, kx3, kp4, kx4, kp5 = jax.random.split(root, 9)

    # ---- small smoke test, both projection modes (resident-weight path) ----
    B, T, Din, Dout = 2, 8, 32, 64
    x = jax.random.normal(kx, (B, T, Din), jnp.float32)

    emb_lin = Embed(Din, Dout, bias=True, proj="linear", key=kp1)
    y = jax.block_until_ready(emb_lin(x))
    _check(y, _linear_ref(x, emb_lin.w, emb_lin.b), 1e-4, 1e-4, "linear small")

    emb_conv = Embed(Din, Dout, bias=True, proj="conv", key=kp2)
    y = jax.block_until_ready(emb_conv(x))
    _check(y, _conv1d_ref(x, emb_conv.w, emb_conv.b), 1e-4, 1e-4, "conv small")

    # ---- K-tiled streaming linear fallback (forced; Din padded 640 -> 1024) ----
    B2, T2, Din2, Dout2 = 2, 64, 640, 256
    x2 = jax.random.normal(kx2, (B2, T2, Din2), jnp.float32)
    emb_lin2 = Embed(Din2, Dout2, bias=True, proj="linear", key=kp3)
    y2 = jax.block_until_ready(
        embed_linear(x2, emb_lin2.w, emb_lin2.b, force_stream=True))
    _check(y2, _linear_ref(x2, emb_lin2.w, emb_lin2.b), 2e-3, 2e-3, "linear k-tiled")

    # ---- time-tiled conv path (forced TT=8 halo tiles, T padded 20 -> 24) ----
    Bc, Tc, Dinc, Doutc = 2, 20, 32, 64
    xc = jax.random.normal(kx3, (Bc, Tc, Dinc), jnp.float32)
    emb_conv2 = Embed(Dinc, Doutc, bias=True, proj="conv", key=kp4)
    yc = jax.block_until_ready(embed_conv1d(xc, emb_conv2.w, emb_conv2.b, force_tt=8))
    _check(yc, _conv1d_ref(xc, emb_conv2.w, emb_conv2.b), 1e-4, 1e-4, "conv time-tiled")

    # ---- fused-tap conv path (Din=128 -> one K=3*Din matmul) ----
    Bf, Tf, Dinf, Doutf = 2, 16, 128, 256
    xf = jax.random.normal(kx4, (Bf, Tf, Dinf), jnp.float32)
    emb_conv3 = Embed(Dinf, Doutf, bias=True, proj="conv", key=kp5)
    yf = jax.block_until_ready(emb_conv3(xf))
    _check(yf, _conv1d_ref(xf, emb_conv3.w, emb_conv3.b), 2e-3, 2e-3, "conv fused taps")

    # ---- bf16 inputs/weights (f32 accumulation inside the kernels) ----
    x_bf = x.astype(jnp.bfloat16)
    w_bf, b_bf = emb_lin.w.astype(jnp.bfloat16), emb_lin.b.astype(jnp.bfloat16)
    y_bf = jax.block_until_ready(embed_linear(x_bf, w_bf, b_bf))
    _check(y_bf, _linear_ref(x_bf, w_bf, b_bf), 3e-2, 3e-2, "linear bf16")

    wc_bf, bc_bf = emb_conv.w.astype(jnp.bfloat16), emb_conv.b.astype(jnp.bfloat16)
    yc_bf = jax.block_until_ready(embed_conv1d(x_bf, wc_bf, bc_bf))
    _check(yc_bf, _conv1d_ref(x_bf, wc_bf, bc_bf), 3e-2, 3e-2, "conv bf16")

    print("KERNEL_OK")
</pallas_src>

<mosaic_0001>
module attributes {stable_mosaic.version = 11 : i64} {
  func.func @_linear_resident_kernel(%arg0: i32, %arg1: memref<16x32xf32, #tpu.memory_space<vmem>>, %arg2: memref<32x64xf32, #tpu.memory_space<vmem>>, %arg3: memref<1x64xf32, #tpu.memory_space<vmem>>, %arg4: memref<16x64xf32, #tpu.memory_space<vmem>>) attributes {dimension_semantics = [#tpu.dimension_semantics<parallel>], iteration_bounds = array<i64: 1>, scalar_prefetch = 0 : i64, scratch_operands = 0 : i64, tpu.core_type = #tpu.core_type<tc>, window_params = [{transform_indices = @transform_0, window_bounds = array<i64: 16, 32>}, {pipeline_mode = #tpu.pipeline_mode<synchronous>, transform_indices = @transform_1, window_bounds = array<i64: 32, 64>}, {pipeline_mode = #tpu.pipeline_mode<synchronous>, transform_indices = @transform_2, window_bounds = array<i64: 1, 64>}, {transform_indices = @transform_3, window_bounds = array<i64: 16, 64>}]} {
    %c0 = arith.constant 0 : index
    %c0_0 = arith.constant 0 : index
    %0 = vector.load %arg1[%c0, %c0_0] : memref<16x32xf32, #tpu.memory_space<vmem>>, vector<16x32xf32>
    %c0_1 = arith.constant 0 : index
    %c0_2 = arith.constant 0 : index
    %1 = vector.load %arg2[%c0_1, %c0_2] : memref<32x64xf32, #tpu.memory_space<vmem>>, vector<32x64xf32>
    %cst = arith.constant dense<0.000000e+00> : vector<16x64xf32>
    %2 = tpu.matmul %0, %1, %cst {dimension_numbers = #tpu.dot_dimension_numbers<[1], [0], [0], [1], [0, 0, 1, 1], [], []>} : vector<16x32xf32>, vector<32x64xf32>, vector<16x64xf32> -> vector<16x64xf32>
    %c0_3 = arith.constant 0 : index
    %c0_4 = arith.constant 0 : index
    %3 = vector.load %arg3[%c0_3, %c0_4] : memref<1x64xf32, #tpu.memory_space<vmem>>, vector<1x64xf32>
    %4 = vector.broadcast %3 : vector<1x64xf32> to vector<16x64xf32>
    %5 = arith.addf %2, %4 : vector<16x64xf32>
    %c0_5 = arith.constant 0 : index
    %c0_6 = arith.constant 0 : index
    %6 = vector.load %arg4[%c0_5, %c0_6] : memref<16x64xf32, #tpu.memory_space<vmem>>, vector<16x64xf32>
    tpu.vector_store %arg4[%c0_5, %c0_6], %5 {strides = array<i32>} : memref<16x64xf32, #tpu.memory_space<vmem>>, vector<16x64xf32>,
    return
  }
  func.func @transform_0(%arg0: i32) -> (i32, i32) {
    %c0_i32 = arith.constant 0 : i32
    %c0_i32_0 = arith.constant 0 : i32
    return %arg0, %c0_i32 : i32, i32
  }
  func.func @transform_1(%arg0: i32) -> (i32, i32) {
    %c0_i32 = arith.constant 0 : i32
    %c0_i32_0 = arith.constant 0 : i32
    %c0_i32_1 = arith.constant 0 : i32
    return %c0_i32, %c0_i32_0 : i32, i32
  }
  func.func @transform_2(%arg0: i32) -> (i32, i32) {
    %c0_i32 = arith.constant 0 : i32
    %c0_i32_0 = arith.constant 0 : i32
    %c0_i32_1 = arith.constant 0 : i32
    return %c0_i32, %c0_i32_0 : i32, i32
  }
  func.func @transform_3(%arg0: i32) -> (i32, i32) {
    %c0_i32 = arith.constant 0 : i32
    %c0_i32_0 = arith.constant 0 : i32
    return %arg0, %c0_i32 : i32, i32
  }
}

</mosaic_0001>

<bundles_post_ra>
// kernel: tpu_custom_call.1
= control target key start
LH: loop header
LB: loop body
LE: loop exit
PB: predicated region body
PF: predicated region fallthrough
CT: control target
= control target key end

     0   :  { %8 = vsyncpa [#allocation3], 0  ;;  %s337_s0 = inlined_call_operand.hbm [shape: f32[16,32], index: 0, kind: input, shape index: {}]   ;;  %s338_s1 = inlined_call_operand.hbm [shape: f32[32,64], index: 1, kind: input, shape index: {}]   ;;  %s339_s2 = inlined_call_operand.vmem [shape: f32[1,64], index: 2, kind: input, shape index: {}]   ;;  %s340_s3 = inlined_call_operand.hbm [shape: f32[16,64], index: 3, kind: output, shape index: {}]  }
   0x1   :  { %9 = vsyncpa [#allocation6], 0 }
   0x2   :  { %10 = vsyncpa [#allocation4], 0  ;;  %s264_s12 = smov [#allocation2]   ;;  %s192_s16 = scalar_lea.hbm %s337_s0, 256 }
   0x3   :  { %s16_s13 = sshll.u32 %s264_s12, 4  ;;  %p193_p0 = scmp.ne.s32.totalorder %s337_s0, %s192_s16  ;;  %s17_s13 = int_to_ptr.vmem [resolvable:$true] %s16_s13 }
   0x4   :  { %p196_p1 = scmp.lt.u32.totalorder %s192_s16, %s337_s0 }
   0x6   :  { %p198_p2 = pnand %p196_p1, %p193_p0 }
   0x8   :  { %201 = shalt.err (!%p198_p2)
}
   0x9   :  { %s202_s21 = scalar_lea.vmem %s17_s13, 256  ;;  %p207_p4 = scmp.lt.s32.totalorder %s17_s13, %s17_s13 }
   0xa   :  { %p203_p3 = scmp.ne.s32.totalorder %s17_s13, %s202_s21  ;;  %p208_p5 = scmp.lt.s32.totalorder %s202_s21, %s202_s21 }
   0xc   :  { %p209_p6 = por %p208_p5, %p207_p4 }
   0xe   :  { %p210_p7 = pnand %p209_p6, %p203_p3 }
  0x10   :  { %213 = shalt.err (!%p210_p7)
}
  0x11   :  { %s265_s22 = smov 128   ;;  %s266_s23 = smov 8  }
  0x12   :  { %22 = dma.hbm_to_vmem [thread:$0]  %s337_s0, 256, %s17_s13, [#allocation3], %s265_s22, %s265_s22, %s266_s23  }
  0x13   :  { %s267_s26 = smov [#allocation5]   ;;  %s214_s30 = scalar_lea.hbm %s338_s1, 512 }
  0x14   :  { %s28_s27 = sshll.u32 %s267_s26, 4  ;;  %p215_p8 = scmp.ne.s32.totalorder %s338_s1, %s214_s30  ;;  %s29_s27 = int_to_ptr.vmem [resolvable:$true] %s28_s27 }
  0x15   :  { %p218_p9 = scmp.lt.u32.totalorder %s214_s30, %s338_s1 }
  0x17   :  { %p220_p10 = pnand %p218_p9, %p215_p8 }
  0x19   :  { %223 = shalt.err (!%p220_p10)
}
  0x1a   :  { %s224_s8 = scalar_lea.vmem %s29_s27, 512  ;;  %p229_p12 = scmp.lt.s32.totalorder %s29_s27, %s29_s27 }
  0x1b   :  { %p225_p11 = scmp.ne.s32.totalorder %s29_s27, %s224_s8  ;;  %p230_p13 = scmp.lt.s32.totalorder %s224_s8, %s224_s8 }
  0x1d   :  { %p231_p0 = por %p230_p13, %p229_p12 }
  0x1f   :  { %p232_p1 = pnand %p231_p0, %p225_p11 }
  0x21   :  { %235 = shalt.err (!%p232_p1)
}
  0x22   :  { %34 = dma.hbm_to_vmem [thread:$0]  %s338_s1, 512, %s29_s27, [#allocation6], %s265_s22, %s265_s22, %s266_s23  }
  0x23   :  { %258 = dma.done.wait [#allocation3], 256  }
  0x24   :  { %259 = vsyncadd [#allocation3], 4294967040 }
  0x25   :  { %260 = dma.done.wait [#allocation6], 512  }
  0x26   :  { %261 = vsyncadd [#allocation6], 4294966784  ;;  %vm56_vm0 = vcmask 261120   ;;  %v45_v0 = vld [vmem:[#allocation5] sm:$0xff]  ;;  %v46_v1 = vld [vmem:[#allocation5 + $0x8] sm:$0xff]  ;;  %s268_s11 = smov [#allocation7]  }
  0x27   :  { %v47_v2 = vld [vmem:[#allocation5 + $0x10] sm:$0xff]  ;;  %v179_v3 = vpack.c.bf16 %v46_v1, %v45_v0  ;;  %v48_v4 = vld [vmem:[#allocation5 + $0x18] sm:$0xff]  ;;  %s146_s12 = sshll.u32 %s268_s11, 4  ;;  %vm138_vm1 = vcmask 523264   ;;  %s147_s12 = int_to_ptr.vmem [resolvable:$true] %s146_s12 }
  0x28   :  { %v43_v5 = vld [vmem:[#allocation2] sm:$0xff]  ;;  %v183_v6 = vpack.c.bf16 %v48_v4, %v47_v2  ;;  %v44_v7 = vld [vmem:[#allocation2 + $0x8] sm:$0xff]  ;;  %s236_s13 = scalar_lea.vmem %s147_s12, 256  ;;  %p241_p3 = scmp.lt.s32.totalorder %s147_s12, %s147_s12 }
  0x29   :  { %176 = vmatprep.mubr.msk.f32.mxu0 %vm56_vm0, %v43_v5  ;;  %180 = vmatprep.subr.bf16.mxu0 %v179_v3  ;;  %v159_v8 = vld [vmem:[%s339_s2] ss:$0 sm:$0xff]  ;;  %p237_p2 = scmp.ne.s32.totalorder %s147_s12, %s236_s13  ;;  %p242_p4 = scmp.lt.s32.totalorder %s236_s13, %s236_s13 }
  0x2a   :  { %182 = vmatpush3.bf16.msra.mxu0 %v179_v3 }
  0x2b   :  { %184 = vmatprep.subr.bf16.mxu0 %v183_v6  ;;  %p243_p5 = por %p242_p4, %p241_p3 }
  0x2d   :  { %p244_p6 = pnand %p243_p5, %p237_p2 }
  0x2e   :  { %186 = vmatpush3.bf16.msra.mxu0 %v183_v6 }
  0x31   :  { %177 = vmatmul.mubr.msk.f32.vlgmr.msra.gmra.mrb[0].mxu0 %vm56_vm0, %v44_v7 }
 0x104   :  { %v178_v9 = vpop.f32.mrb[0].mxu0 }
 0x105   :  { %v135_v10 = vadd.f32 %v178_v9, %v159_v8  ;;  %v129_v11 = vpop.f32.mrb[1].mxu0 }
 0x106   :  { %v130_v12 = vadd.f32 %v159_v8, %v129_v11 }
 0x107   :  { %140 = vst.msk [vmem:[#allocation7 + $0x8] sm:$0xff] %vm138_vm1, %v135_v10 }
 0x108   :  { %139 = vst.msk [vmem:[#allocation7] sm:$0xff] %vm138_vm1, %v130_v12 }
 0x109   :  { %247 = shalt.err (!%p244_p6)
}
 0x10a   :  { %s248_s2 = scalar_lea.hbm %s340_s3, 256 }
 0x10b   :  { %p249_p7 = scmp.ne.s32.totalorder %s340_s3, %s248_s2  ;;  %p252_p8 = scmp.lt.u32.totalorder %s248_s2, %s340_s3 }
 0x10d   :  { %p254_p9 = pnand %p252_p8, %p249_p7 }
 0x10f   :  { %257 = shalt.err (!%p254_p9)
}
 0x110   :  { %152 = dma.vmem_to_hbm [thread:$0]  %s147_s12, 256, %s340_s3, [#allocation4], %s265_s22, %s265_s22, %s266_s23  }
 0x111   :  { %262 = dma.done.wait [#allocation4], 256  }
 0x112   :  { %263 = vsyncadd [#allocation4], 4294967040 }
 0x113   :  { %156 = vsyncpa [#allocation3], 1 }
 0x114   :  { %157 = vsyncpa [#allocation6], 1 }
 0x115   :  { %158 = vsyncpa [#allocation4], 1 }

</bundles_post_ra>
